<compile_context>
chip_gen: v7x
topology: tpu7x:2x2x1
jax: 0.10.0
libtpu: 0.0.40
codegen_flags: <defaults>
</compile_context>

<pallas_src>
import math

import jax
import jax.numpy as jnp
from jax.experimental import pallas as pl
from jax.experimental.pallas import tpu as pltpu


def _swa_kernel(q_ref, k_ref, v_ref, o_ref):
    # Each grid step handles a batch of Bt (n, c) slices: refs are (Bt, H, W).
    q = q_ref[...]                     # native dtype (f32 or bf16)
    k = k_ref[...]
    v = v_ref[...]

    scale = 1.0 / math.sqrt(q.shape[-1])

    # attn[b] = q[b] @ k[b]^T / sqrt(W)  -> (Bt, H, H); contraction on the last
    # (lane) axis, MXU matmul with f32 accumulation (no explicit transpose/casts).
    attn = jnp.einsum(
        "bhw,bjw->bhj", q, k, preferred_element_type=jnp.float32
    ) * scale

    # Numerically stable softmax over the last dim, in f32.
    m = jnp.max(attn, axis=-1, keepdims=True)
    e = jnp.exp(attn - m)
    denom = jnp.sum(e, axis=-1, keepdims=True)
    p = e * pl.reciprocal(denom, approx=True)   # EUP vrcp; VPU slots stay free

    # out[b] = p[b] @ v[b]  -> (Bt, H, W); second matmul in v's dtype, f32 acc.
    out = jnp.einsum(
        "bhj,bjw->bhw", p.astype(v.dtype), v, preferred_element_type=jnp.float32
    )
    o_ref[...] = out.astype(o_ref.dtype)


def spatial_wise_attention(q, k, v, require_scaling=True, block_batch=128,
                           vmem_limit_bytes=32 * 1024 * 1024):
    """q, k, v: (N, C, H, W) arrays (f32 or bf16).  Returns (N, C, H, W)."""
    assert require_scaling, "only the scaled variant is implemented here"
    # TODO(synk): the require_scaling=False branch (no /sqrt(n), no softmax) is
    # not implemented; only the default scaled module configuration is covered.
    N, C, H, W = q.shape
    B = N * C

    qf = q.reshape(B, H, W)
    kf = k.reshape(B, H, W)
    vf = v.reshape(B, H, W)

    # Batch Bt slices per grid step; pad B up to a multiple of Bt if needed.
    bt = min(block_batch, B)
    pad = (-B) % bt
    if pad:
        padding = ((0, pad), (0, 0), (0, 0))
        qf = jnp.pad(qf, padding)
        kf = jnp.pad(kf, padding)
        vf = jnp.pad(vf, padding)
    b_padded = B + pad

    # Block covers the full (H, W) extent (satisfies the (8,128) rule via
    # full-extent dims); the leading batch-tile dim is unconstrained.
    spec = pl.BlockSpec((bt, H, W), lambda b: (b, 0, 0))

    out = pl.pallas_call(
        _swa_kernel,
        out_shape=jax.ShapeDtypeStruct((b_padded, H, W), q.dtype),
        grid_spec=pltpu.PrefetchScalarGridSpec(
            num_scalar_prefetch=0,
            grid=(b_padded // bt,),
            in_specs=[spec, spec, spec],
            out_specs=spec,
        ),
        compiler_params=pltpu.CompilerParams(
            dimension_semantics=("parallel",),   # shards across TCs on v7x
            vmem_limit_bytes=vmem_limit_bytes,
        ),
    )(qf, kf, vf)

    if pad:
        out = out[:B]
    return out.reshape(N, C, H, W)


def _reference(q, k, v):
    # Pure-JAX reference matching the PyTorch module semantics.
    n = k.shape[-1]
    attn = jnp.einsum("nchw,ncjw->nchj", q, k) / math.sqrt(n)
    p = jax.nn.softmax(attn, axis=-1)
    return jnp.einsum("nchj,ncjw->nchw", p, v)


if __name__ == "__main__":
    key = jax.random.PRNGKey(0)
    kq, kk, kv = jax.random.split(key, 3)
    N, C, H, W = 2, 4, 16, 16
    q = jax.random.normal(kq, (N, C, H, W), dtype=jnp.float32)
    k = jax.random.normal(kk, (N, C, H, W), dtype=jnp.float32)
    v = jax.random.normal(kv, (N, C, H, W), dtype=jnp.float32)

    out = spatial_wise_attention(q, k, v)
    out = jax.block_until_ready(out)

    ref = _reference(q, k, v)
    assert out.shape == (N, C, H, W)
    # Tolerance loosened vs. 1e-5 because the softmax denominator uses the
    # approximate (EUP) reciprocal; error is ~1e-4 relative.
    assert jnp.allclose(out, ref, atol=2e-3, rtol=2e-3), "mismatch vs reference"
    print("KERNEL_OK")
</pallas_src>

<mosaic_0001>
module attributes {stable_mosaic.version = 11 : i64} {
  func.func @_swa_kernel(%arg0: i32, %arg1: memref<8x16x16xf32, #tpu.memory_space<vmem>>, %arg2: memref<8x16x16xf32, #tpu.memory_space<vmem>>, %arg3: memref<8x16x16xf32, #tpu.memory_space<vmem>>, %arg4: memref<8x16x16xf32, #tpu.memory_space<vmem>>) attributes {dimension_semantics = [#tpu.dimension_semantics<parallel>], iteration_bounds = array<i64: 1>, scalar_prefetch = 0 : i64, scratch_operands = 0 : i64, tpu.core_type = #tpu.core_type<tc>, window_params = [{transform_indices = @transform_0, window_bounds = array<i64: 8, 16, 16>}, {transform_indices = @transform_1, window_bounds = array<i64: 8, 16, 16>}, {transform_indices = @transform_2, window_bounds = array<i64: 8, 16, 16>}, {transform_indices = @transform_3, window_bounds = array<i64: 8, 16, 16>}]} {
    %c0 = arith.constant 0 : index
    %c0_0 = arith.constant 0 : index
    %c0_1 = arith.constant 0 : index
    %0 = vector.load %arg1[%c0, %c0_0, %c0_1] : memref<8x16x16xf32, #tpu.memory_space<vmem>>, vector<8x16x16xf32>
    %c0_2 = arith.constant 0 : index
    %c0_3 = arith.constant 0 : index
    %c0_4 = arith.constant 0 : index
    %1 = vector.load %arg2[%c0_2, %c0_3, %c0_4] : memref<8x16x16xf32, #tpu.memory_space<vmem>>, vector<8x16x16xf32>
    %c0_5 = arith.constant 0 : index
    %c0_6 = arith.constant 0 : index
    %c0_7 = arith.constant 0 : index
    %2 = vector.load %arg3[%c0_5, %c0_6, %c0_7] : memref<8x16x16xf32, #tpu.memory_space<vmem>>, vector<8x16x16xf32>
    "tpu.trace_start"() <{level = 10 : i32, message = "bhw,bjw->bhj"}> : () -> ()
    %cst = arith.constant dense<0.000000e+00> : vector<8x16x16xf32>
    %3 = tpu.matmul %0, %1, %cst {dimension_numbers = #tpu.dot_dimension_numbers<[2], [2], [1], [1], [0, 0, 0, 1, 1, 1], [0], [0]>} : vector<8x16x16xf32>, vector<8x16x16xf32>, vector<8x16x16xf32> -> vector<8x16x16xf32>
    "tpu.trace_stop"() : () -> ()
    %cst_8 = arith.constant 2.500000e-01 : f32
    %4 = vector.broadcast %cst_8 : f32 to vector<8x16x16xf32>
    %5 = arith.mulf %3, %4 : vector<8x16x16xf32>
    %cst_9 = arith.constant dense<0xFF800000> : vector<8x16xf32>
    %6 = vector.multi_reduction <maximumf>, %5, %cst_9 [2] : vector<8x16x16xf32> to vector<8x16xf32>
    %7 = vector.shape_cast %6 : vector<8x16xf32> to vector<8x16x1xf32>
    %8 = vector.broadcast %7 : vector<8x16x1xf32> to vector<8x16x16xf32>
    %9 = arith.subf %5, %8 : vector<8x16x16xf32>
    %10 = math.exp %9 : vector<8x16x16xf32>
    %cst_10 = arith.constant dense<0.000000e+00> : vector<8x16xf32>
    %11 = vector.multi_reduction <add>, %10, %cst_10 [2] : vector<8x16x16xf32> to vector<8x16xf32>
    %12 = vector.shape_cast %11 : vector<8x16xf32> to vector<8x16x1xf32>
    %13 = tpu.reciprocal %12 {approx = true} : vector<8x16x1xf32> -> vector<8x16x1xf32>
    %14 = vector.broadcast %13 : vector<8x16x1xf32> to vector<8x16x16xf32>
    %15 = arith.mulf %10, %14 : vector<8x16x16xf32>
    "tpu.trace_start"() <{level = 10 : i32, message = "bhj,bjw->bhw"}> : () -> ()
    %cst_11 = arith.constant dense<0.000000e+00> : vector<8x16x16xf32>
    %16 = tpu.matmul %15, %2, %cst_11 {dimension_numbers = #tpu.dot_dimension_numbers<[2], [1], [1], [2], [0, 0, 0, 1, 1, 2], [0], [0]>} : vector<8x16x16xf32>, vector<8x16x16xf32>, vector<8x16x16xf32> -> vector<8x16x16xf32>
    "tpu.trace_stop"() : () -> ()
    %c0_12 = arith.constant 0 : index
    %c0_13 = arith.constant 0 : index
    %c0_14 = arith.constant 0 : index
    %17 = vector.load %arg4[%c0_12, %c0_13, %c0_14] : memref<8x16x16xf32, #tpu.memory_space<vmem>>, vector<8x16x16xf32>
    tpu.vector_store %arg4[%c0_12, %c0_13, %c0_14], %16 {strides = array<i32>} : memref<8x16x16xf32, #tpu.memory_space<vmem>>, vector<8x16x16xf32>,
    return
  }
  func.func @transform_0(%arg0: i32) -> (i32, i32, i32) {
    %c0_i32 = arith.constant 0 : i32
    %c0_i32_0 = arith.constant 0 : i32
    %c0_i32_1 = arith.constant 0 : i32
    return %arg0, %c0_i32, %c0_i32_0 : i32, i32, i32
  }
  func.func @transform_1(%arg0: i32) -> (i32, i32, i32) {
    %c0_i32 = arith.constant 0 : i32
    %c0_i32_0 = arith.constant 0 : i32
    %c0_i32_1 = arith.constant 0 : i32
    return %arg0, %c0_i32, %c0_i32_0 : i32, i32, i32
  }
  func.func @transform_2(%arg0: i32) -> (i32, i32, i32) {
    %c0_i32 = arith.constant 0 : i32
    %c0_i32_0 = arith.constant 0 : i32
    %c0_i32_1 = arith.constant 0 : i32
    return %arg0, %c0_i32, %c0_i32_0 : i32, i32, i32
  }
  func.func @transform_3(%arg0: i32) -> (i32, i32, i32) {
    %c0_i32 = arith.constant 0 : i32
    %c0_i32_0 = arith.constant 0 : i32
    %c0_i32_1 = arith.constant 0 : i32
    return %arg0, %c0_i32, %c0_i32_0 : i32, i32, i32
  }
}

</mosaic_0001>

<bundles_post_ra>
// kernel: tpu_custom_call.1
= control target key start
LH: loop header
LB: loop body
LE: loop exit
PB: predicated region body
PF: predicated region fallthrough
CT: control target
= control target key end

     0   :  { %8 = vsyncpa [#allocation3], 0  ;;  %s2482_s0 = inlined_call_operand.hbm [shape: f32[8,16,16], index: 0, kind: input, shape index: {}]   ;;  %s2483_s1 = inlined_call_operand.hbm [shape: f32[8,16,16], index: 1, kind: input, shape index: {}]   ;;  %s2484_s2 = inlined_call_operand.hbm [shape: f32[8,16,16], index: 2, kind: input, shape index: {}]   ;;  %s2485_s3 = inlined_call_operand.hbm [shape: f32[8,16,16], index: 3, kind: output, shape index: {}]  }
   0x1   :  { %9 = vsyncpa [#allocation6], 0 }
   0x2   :  { %10 = vsyncpa [#allocation4], 0  ;;  %s2143_s12 = smov [#allocation5]   ;;  %s2144_s14 = smov [#allocation2]  }
   0x3   :  { %s28_s13 = sshll.u32 %s2143_s12, 4  ;;  %s16_s15 = sshll.u32 %s2144_s14, 4  ;;  %s29_s13 = int_to_ptr.vmem [resolvable:$true] %s28_s13  ;;  %s2169_s15 = int_to_ptr.vmem [resolvable:$true] %s16_s15 }
   0x4   :  { %s2049_s18 = scalar_lea.hbm %s2483_s1, 2048 }
   0x5   :  { %p2050_p0 = scmp.ne.s32.totalorder %s2483_s1, %s2049_s18  ;;  %p2053_p1 = scmp.lt.u32.totalorder %s2049_s18, %s2483_s1 }
   0x7   :  { %p2055_p2 = pnand %p2053_p1, %p2050_p0 }
   0x9   :  { %2058 = shalt.err (!%p2055_p2)
}
   0xa   :  { %s2059_s23 = scalar_lea.vmem %s29_s13, 2048  ;;  %p2064_p4 = scmp.lt.s32.totalorder %s29_s13, %s29_s13 }
   0xb   :  { %p2060_p3 = scmp.ne.s32.totalorder %s29_s13, %s2059_s23  ;;  %p2065_p5 = scmp.lt.s32.totalorder %s2059_s23, %s2059_s23 }
   0xd   :  { %p2066_p6 = por %p2065_p5, %p2064_p4 }
   0xf   :  { %p2067_p7 = pnand %p2066_p6, %p2060_p3 }
  0x11   :  { %2070 = shalt.err (!%p2067_p7)
}
  0x12   :  { %s2145_s24 = smov 128   ;;  %s2146_s25 = smov 8  }
  0x13   :  { %34 = dma.hbm_to_vmem [thread:$0]  %s2483_s1, 2048, %s29_s13, [#allocation6], %s2145_s24, %s2145_s24, %s2146_s25  }
  0x14   :  { %s2071_s30 = scalar_lea.hbm %s2482_s0, 2048 }
  0x15   :  { %p2072_p8 = scmp.ne.s32.totalorder %s2482_s0, %s2071_s30  ;;  %p2075_p9 = scmp.lt.u32.totalorder %s2071_s30, %s2482_s0 }
  0x17   :  { %p2077_p10 = pnand %p2075_p9, %p2072_p8 }
  0x19   :  { %2080 = shalt.err (!%p2077_p10)
}
  0x1a   :  { %s2081_s8 = scalar_lea.vmem %s2169_s15, 2048  ;;  %p2086_p12 = scmp.lt.s32.totalorder %s2169_s15, %s2169_s15 }
  0x1b   :  { %p2082_p11 = scmp.ne.s32.totalorder %s2169_s15, %s2081_s8  ;;  %p2087_p13 = scmp.lt.s32.totalorder %s2081_s8, %s2081_s8 }
  0x1d   :  { %p2088_p0 = por %p2087_p13, %p2086_p12 }
  0x1f   :  { %p2089_p1 = pnand %p2088_p0, %p2082_p11 }
  0x21   :  { %2092 = shalt.err (!%p2089_p1)
}
  0x22   :  { %22 = dma.hbm_to_vmem [thread:$0]  %s2482_s0, 2048, %s2169_s15, [#allocation3], %s2145_s24, %s2145_s24, %s2146_s25  }
  0x23   :  { %s2147_s10 = smov [#allocation7]   ;;  %s2093_s14 = scalar_lea.hbm %s2484_s2, 2048 }
  0x24   :  { %s40_s11 = sshll.u32 %s2147_s10, 4  ;;  %p2094_p2 = scmp.ne.s32.totalorder %s2484_s2, %s2093_s14  ;;  %s41_s11 = int_to_ptr.vmem [resolvable:$true] %s40_s11 }
  0x25   :  { %p2097_p3 = scmp.lt.u32.totalorder %s2093_s14, %s2484_s2 }
  0x27   :  { %p2099_p4 = pnand %p2097_p3, %p2094_p2 }
  0x29   :  { %2102 = shalt.err (!%p2099_p4)
}
  0x2a   :  { %s2103_s20 = scalar_lea.vmem %s41_s11, 2048  ;;  %p2108_p6 = scmp.lt.s32.totalorder %s41_s11, %s41_s11 }
  0x2b   :  { %p2104_p5 = scmp.ne.s32.totalorder %s41_s11, %s2103_s20  ;;  %p2109_p7 = scmp.lt.s32.totalorder %s2103_s20, %s2103_s20 }
  0x2d   :  { %p2110_p8 = por %p2109_p7, %p2108_p6 }
  0x2f   :  { %p2111_p9 = pnand %p2110_p8, %p2104_p5 }
  0x31   :  { %2114 = shalt.err (!%p2111_p9)
}
  0x32   :  { %46 = dma.hbm_to_vmem [thread:$0]  %s2484_s2, 2048, %s41_s11, [#allocation6], %s2145_s24, %s2145_s24, %s2146_s25  }
  0x33   :  { %2137 = dma.done.wait [#allocation3], 2048  }
  0x34   :  { %2138 = vsyncadd [#allocation3], 4294965248 }
  0x35   :  { %2139 = dma.done.wait [#allocation6], 4096  }
  0x36   :  { %2140 = vsyncadd [#allocation6], 4294963200  ;;  %vm104_vm0 = vcmask 130048   ;;  %v72_v1 = vld [vmem:[#allocation5] sm:$0xff]  ;;  %v73_v2 = vld [vmem:[#allocation5 + $0x8] sm:$0xff]  ;;  %s2148_s2 = smov [#allocation8]  }
  0x37   :  { %vm2223_vm1 = vmpackc.low %vm104_vm0, %vm104_vm0  ;;  %v74_v3 = vld [vmem:[#allocation5 + $0x10] sm:$0xff]  ;;  %v1899_v4 = vpack.c.bf16 %v73_v2, %v72_v1  ;;  %v75_v5 = vld [vmem:[#allocation5 + $0x18] sm:$0xff]  ;;  %s1662_s21 = sshll.u32 %s2148_s2, 4  ;;  %s1663_s21 = int_to_ptr.vmem [resolvable:$true] %s1662_s21 }
  0x38   :  { %v56_v6 = vld [vmem:[#allocation2] sm:$0xff]  ;;  %v1905_v7 = vpack.c.bf16 %v75_v5, %v74_v3  ;;  %v58_v8 = vld [vmem:[#allocation2 + $0x10] sm:$0xff]  ;;  %v77_v10 = vld [vmem:[#allocation5 + $0x28] sm:$0xff]  ;;  %s2115_s22 = scalar_lea.vmem %s1663_s21, 2048  ;;  %p2120_p11 = scmp.lt.s32.totalorder %s1663_s21, %s1663_s21 }
  0x39   :  { %1791 = vmatprep.mubr.msk.f32.mxu0 %vm104_vm0, %v56_v6  ;;  %v76_v9 = vld [vmem:[#allocation5 + $0x20] sm:$0xff]  ;;  %1901 = vmatprep.subr.msk.bf16.mxu0 %vm2223_vm1, %v1899_v4  ;;  %v78_v12 = vld [vmem:[#allocation5 + $0x30] sm:$0xff]  ;;  %v79_v13 = vld [vmem:[#allocation5 + $0x38] sm:$0xff]  ;;  %p2116_p10 = scmp.ne.s32.totalorder %s1663_s21, %s2115_s22  ;;  %p2121_p12 = scmp.lt.s32.totalorder %s2115_s22, %s2115_s22 }
  0x3a   :  { %1798 = vmatprep.mubr.msk.f32.mxu1 %vm104_vm0, %v58_v8  ;;  %v1911_v11 = vpack.c.bf16 %v77_v10, %v76_v9  ;;  %1907 = vmatprep.subr.msk.bf16.mxu1 %vm2223_vm1, %v1905_v7  ;;  %v1917_v14 = vpack.c.bf16 %v79_v13, %v78_v12  ;;  %v80_v15 = vld [vmem:[#allocation5 + $0x40] sm:$0xff]  ;;  %v81_v16 = vld [vmem:[#allocation5 + $0x48] sm:$0xff]  ;;  %v82_v18 = vld [vmem:[#allocation5 + $0x50] sm:$0xff] }
  0x3b   :  { %1904 = vmatpush3.bf16.xpose.msk.msra.mxu0 %vm2223_vm1, %v1899_v4  ;;  %1910 = vmatpush3.bf16.xpose.msk.msra.mxu1 %vm2223_vm1, %v1905_v7  ;;  %v57_v17 = vld [vmem:[#allocation2 + $0x8] sm:$0xff]  ;;  %v83_v19 = vld [vmem:[#allocation5 + $0x58] sm:$0xff]  ;;  %v62_v21 = vld [vmem:[#allocation2 + $0x30] sm:$0xff]  ;;  %v1923_v22 = vpack.c.bf16 %v81_v16, %v80_v15  ;;  %p2122_p13 = por %p2121_p12, %p2120_p11 }
  0x3c   :  { %1913 = vmatprep.subr.msk.bf16.mxu0 %vm2223_vm1, %v1911_v11  ;;  %1919 = vmatprep.subr.msk.bf16.mxu1 %vm2223_vm1, %v1917_v14  ;;  %v59_v20 = vld [vmem:[#allocation2 + $0x18] sm:$0xff]  ;;  %v60_v23 = vld [vmem:[#allocation2 + $0x20] sm:$0xff]  ;;  %v1929_v24 = vpack.c.bf16 %v83_v19, %v82_v18  ;;  %v85_v26 = vld [vmem:[#allocation5 + $0x68] sm:$0xff] }
  0x3d   :  { %v84_v25 = vld [vmem:[#allocation5 + $0x60] sm:$0xff]  ;;  %v61_v27 = vld [vmem:[#allocation2 + $0x28] sm:$0xff]  ;;  %v86_v28 = vld [vmem:[#allocation5 + $0x70] sm:$0xff]  ;;  %p2123_p0 = pnand %p2122_p13, %p2116_p10 }
  0x3e   :  { %v87_v29 = vld [vmem:[#allocation5 + $0x78] sm:$0xff]  ;;  %v66_v31 = vld [vmem:[#allocation2 + $0x50] sm:$0xff]  ;;  %v1935_v32 = vpack.c.bf16 %v85_v26, %v84_v25  ;;  %v64_v33 = vld [vmem:[#allocation2 + $0x40] sm:$0xff] }
  0x3f   :  { %v63_v30 = vld [vmem:[#allocation2 + $0x38] sm:$0xff]  ;;  %v1941_v34 = vpack.c.bf16 %v87_v29, %v86_v28  ;;  %v65_v35 = vld [vmem:[#allocation2 + $0x48] sm:$0xff]  ;;  %v68_v37 = vld [vmem:[#allocation2 + $0x60] sm:$0xff] }
  0x40   :  { %v67_v36 = vld [vmem:[#allocation2 + $0x58] sm:$0xff]  ;;  %v70_v38 = vld [vmem:[#allocation2 + $0x70] sm:$0xff]  ;;  %v69_v39 = vld [vmem:[#allocation2 + $0x68] sm:$0xff] }
  0x41   :  { %v71_v40 = vld [vmem:[#allocation2 + $0x78] sm:$0xff] }
  0x42   :  { %1792 = vmatmul.mubr.msk.f32.vlgmr.msra.gmra.mrb[0].mxu0 %vm104_vm0, %v57_v17  ;;  %1799 = vmatmul.mubr.msk.f32.vlgmr.msra.gmra.mrb[0].mxu1 %vm104_vm0, %v59_v20 }
  0x43   :  { %1916 = vmatpush3.bf16.xpose.msk.msra.mxu0 %vm2223_vm1, %v1911_v11  ;;  %1922 = vmatpush3.bf16.xpose.msk.msra.mxu1 %vm2223_vm1, %v1917_v14 }
  0x44   :  { %1812 = vmatprep.mubr.msk.f32.mxu1 %vm104_vm0, %v62_v21  ;;  %1805 = vmatprep.mubr.msk.f32.mxu0 %vm104_vm0, %v60_v23 }
  0x45   :  { %1925 = vmatprep.subr.msk.bf16.mxu0 %vm2223_vm1, %v1923_v22  ;;  %1931 = vmatprep.subr.msk.bf16.mxu1 %vm2223_vm1, %v1929_v24 }
  0x4a   :  { %1806 = vmatmul.mubr.msk.f32.vlgmr.msra.gmra.mrb[2].mxu0 %vm104_vm0, %v61_v27  ;;  %1813 = vmatmul.mubr.msk.f32.vlgmr.msra.gmra.mrb[2].mxu1 %vm104_vm0, %v63_v30 }
  0x4b   :  { %1928 = vmatpush3.bf16.xpose.msk.msra.mxu0 %vm2223_vm1, %v1923_v22  ;;  %1934 = vmatpush3.bf16.xpose.msk.msra.mxu1 %vm2223_vm1, %v1929_v24 }
  0x4c   :  { %1826 = vmatprep.mubr.msk.f32.mxu1 %vm104_vm0, %v66_v31  ;;  %1819 = vmatprep.mubr.msk.f32.mxu0 %vm104_vm0, %v64_v33 }
  0x4d   :  { %1937 = vmatprep.subr.msk.bf16.mxu0 %vm2223_vm1, %v1935_v32  ;;  %1943 = vmatprep.subr.msk.bf16.mxu1 %vm2223_vm1, %v1941_v34 }
  0x52   :  { %1820 = vmatmul.mubr.msk.f32.vlgmr.msra.gmra.mrb[4].mxu0 %vm104_vm0, %v65_v35  ;;  %1827 = vmatmul.mubr.msk.f32.vlgmr.msra.gmra.mrb[4].mxu1 %vm104_vm0, %v67_v36 }
  0x53   :  { %1940 = vmatpush3.bf16.xpose.msk.msra.mxu0 %vm2223_vm1, %v1935_v32  ;;  %1946 = vmatpush3.bf16.xpose.msk.msra.mxu1 %vm2223_vm1, %v1941_v34 }
  0x54   :  { %1833 = vmatprep.mubr.msk.f32.mxu0 %vm104_vm0, %v68_v37  ;;  %1840 = vmatprep.mubr.msk.f32.mxu1 %vm104_vm0, %v70_v38 }
  0x5a   :  { %1834 = vmatmul.mubr.msk.f32.vlgmr.msra.gmra.mrb[6].mxu0 %vm104_vm0, %v69_v39  ;;  %1841 = vmatmul.mubr.msk.f32.vlgmr.msra.gmra.mrb[6].mxu1 %vm104_vm0, %v71_v40 }
 0x115   :  { %v1793_v41 = vpop.f32.mrb[0].mxu0  ;;  %v1800_v44 = vpop.f32.mrb[0].mxu1 }
 0x116   :  { %v2275_v42 = vmul.f32 0.25, %v1793_v41  ;;  %v183_v43 = vpop.f32.mrb[1].mxu0  ;;  %v2279_v46 = vmul.f32 0.25, %v1800_v44  ;;  %v270_v47 = vpop.f32.mrb[1].mxu1 }
 0x117   :  { %v2277_v45 = vmul.f32 0.25, %v183_v43  ;;  %v2281_v48 = vmul.f32 0.25, %v270_v47 }
 0x118   :  { %v820_v49 = vsel %vm104_vm0, %v2275_v42, -inf  ;;  %v826_v51 = vsel %vm104_vm0, %v2279_v46, -inf }
 0x119   :  { %821 = vmax.xlane.f32.xlu1 %v820_v49  ;;  %v817_v50 = vsel %vm104_vm0, %v2277_v45, -inf  ;;  %v823_v52 = vsel %vm104_vm0, %v2281_v48, -inf }
 0x11a   :  { %818 = vmax.xlane.f32.xlu0 %v817_v50 }
 0x11d   :  { %827 = vmax.xlane.f32.xlu1 %v826_v51  ;;  %v1807_v53 = vpop.f32.mrb[2].mxu0  ;;  %v1814_v54 = vpop.f32.mrb[2].mxu1 }
 0x11e   :  { %824 = vmax.xlane.f32.xlu0 %v823_v52  ;;  %v2291_v55 = vmul.f32 0.25, %v1807_v53  ;;  %v357_v56 = vpop.f32.mrb[3].mxu0  ;;  %v2293_v57 = vmul.f32 0.25, %v1814_v54  ;;  %v444_v58 = vpop.f32.mrb[3].mxu1 }
 0x11f   :  { %v2295_v59 = vmul.f32 0.25, %v357_v56  ;;  %v2297_v60 = vmul.f32 0.25, %v444_v58 }
 0x120   :  { %v832_v61 = vsel %vm104_vm0, %v2291_v55, -inf  ;;  %v838_v62 = vsel %vm104_vm0, %v2293_v57, -inf }
 0x121   :  { %839 = vmax.xlane.f32.xlu1 %v838_v62  ;;  %v835_v63 = vsel %vm104_vm0, %v2297_v60, -inf  ;;  %v829_v0 = vsel %vm104_vm0, %v2295_v59, -inf }
 0x122   :  { %833 = vmax.xlane.f32.xlu0 %v832_v61 }
 0x125   :  { %v1821_v1 = vpop.f32.mrb[4].mxu0  ;;  %v1828_v2 = vpop.f32.mrb[4].mxu1  ;;  %836 = vmax.xlane.f32.xlu1 %v835_v63 }
 0x126   :  { %830 = vmax.xlane.f32.xlu0 %v829_v0  ;;  %v2307_v3 = vmul.f32 0.25, %v1821_v1  ;;  %v531_v4 = vpop.f32.mrb[5].mxu0  ;;  %v2309_v5 = vmul.f32 0.25, %v1828_v2  ;;  %v618_v6 = vpop.f32.mrb[5].mxu1 }
 0x127   :  { %v2311_v7 = vmul.f32 0.25, %v531_v4  ;;  %v2313_v8 = vmul.f32 0.25, %v618_v6 }
 0x128   :  { %v844_v9 = vsel %vm104_vm0, %v2307_v3, -inf  ;;  %v850_v10 = vsel %vm104_vm0, %v2309_v5, -inf }
 0x129   :  { %851 = vmax.xlane.f32.xlu1 %v850_v10  ;;  %v847_v11 = vsel %vm104_vm0, %v2313_v8, -inf  ;;  %v841_v12 = vsel %vm104_vm0, %v2311_v7, -inf }
 0x12a   :  { %845 = vmax.xlane.f32.xlu0 %v844_v9 }
 0x12d   :  { %v1835_v13 = vpop.f32.mrb[6].mxu0  ;;  %v1842_v14 = vpop.f32.mrb[6].mxu1  ;;  %848 = vmax.xlane.f32.xlu1 %v847_v11 }
 0x12e   :  { %842 = vmax.xlane.f32.xlu0 %v841_v12  ;;  %v705_v15 = vpop.f32.mrb[7].mxu0  ;;  %v792_v16 = vpop.f32.mrb[7].mxu1  ;;  %v2327_v19 = vmul.f32 0.25, %v1835_v13  ;;  %v2331_v21 = vmul.f32 0.25, %v1842_v14 }
 0x12f   :  { %v2323_v17 = vmul.f32 0.25, %v705_v15  ;;  %v2325_v18 = vmul.f32 0.25, %v792_v16 }
 0x130   :  { %v856_v23 = vsel %vm104_vm0, %v2327_v19, -inf  ;;  %v862_v24 = vsel %vm104_vm0, %v2331_v21, -inf }
 0x131   :  { %v853_v20 = vsel %vm104_vm0, %v2323_v17, -inf  ;;  %v859_v22 = vsel %vm104_vm0, %v2325_v18, -inf }
 0x132   :  { %854 = vmax.xlane.f32.xlu0 %v853_v20  ;;  %860 = vmax.xlane.f32.xlu1 %v859_v22 }
 0x136   :  { %857 = vmax.xlane.f32.xlu0 %v856_v23  ;;  %863 = vmax.xlane.f32.xlu1 %v862_v24 }
 0x1a6   :  { %v822_v25 = vpop.xlane.xlu1 %821 }
 0x1a7   :  { %v866_v26 = vsub.f32 %v2275_v42, %v822_v25  ;;  %v819_v27 = vpop.xlane.xlu0 %818 }
 0x1a8   :  { %v865_v28 = vsub.f32 %v2277_v45, %v819_v27 }
 0x1a9   :  { %v883_v29 = vmul.f32 1.442695, %v866_v26 }
 0x1aa   :  { %v881_v30 = vmul.f32 1.442695, %v865_v28  ;;  %v828_v31 = vpop.xlane.xlu1 %827 }
 0x1ab   :  { %1985 = vpow2.f32 %v883_v29  ;;  %v868_v32 = vsub.f32 %v2279_v46, %v828_v31  ;;  %v825_v33 = vpop.xlane.xlu0 %824 }
 0x1ac   :  { %v867_v34 = vsub.f32 %v2281_v48, %v825_v33  ;;  %1987 = vpow2.f32 %v881_v30 }
 0x1ad   :  { %v887_v35 = vmul.f32 1.442695, %v868_v32 }
 0x1ae   :  { %v885_v36 = vmul.f32 1.442695, %v867_v34  ;;  %v840_v37 = vpop.xlane.xlu1 %839 }
 0x1af   :  { %1989 = vpow2.f32 %v887_v35  ;;  %v834_v38 = vpop.xlane.xlu0 %833  ;;  %v872_v39 = vsub.f32 %v2293_v57, %v840_v37  ;;  %v89_v37 = vld [vmem:[#allocation7 + $0x8] sm:$0xff] }
 0x1b0   :  { %v870_v40 = vsub.f32 %v2291_v55, %v834_v38  ;;  %1991 = vpow2.f32 %v885_v36  ;;  %v88_v36 = vld [vmem:[#allocation7] sm:$0xff] }
 0x1b1   :  { %v895_v41 = vmul.f32 1.442695, %v872_v39 }
 0x1b2   :  { %v891_v42 = vmul.f32 1.442695, %v870_v40  ;;  %v837_v43 = vpop.xlane.xlu1 %836  ;;  %v1947_v40 = vpack.c.bf16 %v89_v37, %v88_v36 }
 0x1b3   :  { %v831_v44 = vpop.xlane.xlu0 %830  ;;  %1993 = vpow2.f32 %v895_v41  ;;  %v871_v45 = vsub.f32 %v2297_v60, %v837_v43  ;;  %v90_v43 = vld [vmem:[#allocation7 + $0x10] sm:$0xff] }
 0x1b4   :  { %v869_v46 = vsub.f32 %v2295_v59, %v831_v44  ;;  %1995 = vpow2.f32 %v891_v42  ;;  %1948 = vmatprep.subr.bf16.mxu0 %v1947_v40  ;;  %v91_v44 = vld [vmem:[#allocation7 + $0x18] sm:$0xff] }
 0x1b5   :  { %v2347_v47 = vpop.eup %1985  ;;  %v893_v48 = vmul.f32 1.442695, %v871_v45  ;;  %1950 = vmatpush3.bf16.msra.mxu0 %v1947_v40 }
 0x1b6   :  { %v889_v49 = vmul.f32 1.442695, %v869_v46  ;;  %v916_v50 = vsel %vm104_vm0, %v2347_v47, 0.0  ;;  %v2351_v51 = vpop.eup %1987  ;;  %v852_v52 = vpop.xlane.xlu1 %851  ;;  %v1951_v46 = vpack.c.bf16 %v91_v44, %v90_v43 }
 0x1b7   :  { %v846_v53 = vpop.xlane.xlu0 %845  ;;  %917 = vadd.xlane.f32.xlu0 %v916_v50  ;;  %1997 = vpow2.f32 %v893_v48  ;;  %v876_v54 = vsub.f32 %v2309_v5, %v852_v52  ;;  %v913_v60 = vsel %vm104_vm0, %v2351_v51, 0.0  ;;  %v92_v48 = vld [vmem:[#allocation7 + $0x20] sm:$0xff]  ;;  %v94_v52 = vld [vmem:[#allocation7 + $0x30] sm:$0xff] }
 0x1b8   :  { %v874_v55 = vsub.f32 %v2307_v3, %v846_v53  ;;  %1999 = vpow2.f32 %v889_v49  ;;  %1952 = vmatprep.subr.bf16.mxu1 %v1951_v46  ;;  %v93_v49 = vld [vmem:[#allocation7 + $0x28] sm:$0xff]  ;;  %v95_v53 = vld [vmem:[#allocation7 + $0x38] sm:$0xff] }
 0x1b9   :  { %v2355_v56 = vpop.eup %1989  ;;  %v903_v57 = vmul.f32 1.442695, %v876_v54  ;;  %1954 = vmatpush3.bf16.msra.mxu1 %v1951_v46  ;;  %v1955_v50 = vpack.c.bf16 %v93_v49, %v92_v48  ;;  %v1959_v54 = vpack.c.bf16 %v95_v53, %v94_v52 }
 0x1ba   :  { %v899_v58 = vmul.f32 1.442695, %v874_v55  ;;  %v922_v59 = vsel %vm104_vm0, %v2355_v56, 0.0  ;;  %v2361_v61 = vpop.eup %1991  ;;  %v849_v62 = vpop.xlane.xlu1 %848 }
 0x1bb   :  { %923 = vadd.xlane.f32.xlu1 %v922_v59  ;;  %v843_v63 = vpop.xlane.xlu0 %842  ;;  %914 = vadd.xlane.f32.xlu0 %v913_v60  ;;  %2001 = vpow2.f32 %v903_v57  ;;  %v875_v0 = vsub.f32 %v2313_v8, %v849_v62  ;;  %v919_v5 = vsel %vm104_vm0, %v2361_v61, 0.0 }
 0x1bc   :  { %v873_v1 = vsub.f32 %v2311_v7, %v843_v63  ;;  %2003 = vpow2.f32 %v899_v58  ;;  %1956 = vmatprep.subr.bf16.mxu0 %v1955_v50  ;;  %1960 = vmatprep.subr.bf16.mxu1 %v1959_v54 }
 0x1bd   :  { %v2365_v2 = vpop.eup %1993  ;;  %v901_v3 = vmul.f32 1.442695, %v875_v0 }
 0x1be   :  { %v897_v4 = vmul.f32 1.442695, %v873_v1  ;;  %v2369_v6 = vpop.eup %1995  ;;  %v934_v14 = vsel %vm104_vm0, %v2365_v2, 0.0  ;;  %v96_v1 = vld [vmem:[#allocation7 + $0x40] sm:$0xff] }
 0x1bf   :  { %920 = vadd.xlane.f32.xlu1 %v919_v5  ;;  %v855_v9 = vpop.xlane.xlu0 %854  ;;  %2005 = vpow2.f32 %v901_v3  ;;  %v861_v10 = vpop.xlane.xlu1 %860  ;;  %v928_v8 = vsel %vm104_vm0, %v2369_v6, 0.0  ;;  %v97_v3 = vld [vmem:[#allocation7 + $0x48] sm:$0xff] }
 0x1c0   :  { %v877_v11 = vsub.f32 %v2323_v17, %v855_v9  ;;  %2007 = vpow2.f32 %v897_v4  ;;  %v879_v7 = vsub.f32 %v2325_v18, %v861_v10  ;;  %929 = vadd.xlane.f32.xlu0 %v928_v8 }
 0x1c1   :  { %v2375_v12 = vpop.eup %1997 }
 0x1c2   :  { %v905_v13 = vmul.f32 1.442695, %v877_v11  ;;  %v2379_v15 = vpop.eup %1999  ;;  %v909_v16 = vmul.f32 1.442695, %v879_v7  ;;  %v931_v26 = vsel %vm104_vm0, %v2375_v12, 0.0  ;;  %v1963_v7 = vpack.c.bf16 %v97_v3, %v96_v1 }
 0x1c3   :  { %935 = vadd.xlane.f32.xlu1 %v934_v14  ;;  %v858_v20 = vpop.xlane.xlu0 %857  ;;  %v864_v17 = vpop.xlane.xlu1 %863  ;;  %v925_v23 = vsel %vm104_vm0, %v2379_v15, 0.0  ;;  %v99_v14 = vld [vmem:[#allocation7 + $0x58] sm:$0xff] }
 0x1c4   :  { %2009 = vpow2.f32 %v905_v13  ;;  %v878_v22 = vsub.f32 %v2327_v19, %v858_v20  ;;  %v880_v18 = vsub.f32 %v2331_v21, %v864_v17  ;;  %926 = vadd.xlane.f32.xlu0 %v925_v23  ;;  %v98_v13 = vld [vmem:[#allocation7 + $0x50] sm:$0xff] }
 0x1c5   :  { %2011 = vpow2.f32 %v909_v16  ;;  %v2385_v24 = vpop.eup %2001  ;;  %v1967_v23 = vpack.c.bf16 %v99_v14, %v98_v13 }
 0x1c6   :  { %v907_v25 = vmul.f32 1.442695, %v878_v22  ;;  %v2389_v27 = vpop.eup %2003  ;;  %v911_v28 = vmul.f32 1.442695, %v880_v18  ;;  %v946_v21 = vsel %vm104_vm0, %v2385_v24, 0.0 }
 0x1c7   :  { %932 = vadd.xlane.f32.xlu1 %v931_v26  ;;  %v940_v19 = vsel %vm104_vm0, %v2389_v27, 0.0  ;;  %v101_v26 = vld [vmem:[#allocation7 + $0x68] sm:$0xff] }
 0x1c8   :  { %2013 = vpow2.f32 %v907_v25  ;;  %941 = vadd.xlane.f32.xlu0 %v940_v19  ;;  %v100_v25 = vld [vmem:[#allocation7 + $0x60] sm:$0xff] }
 0x1c9   :  { %2015 = vpow2.f32 %v911_v28  ;;  %v2393_v29 = vpop.eup %2005  ;;  %v1971_v36 = vpack.c.bf16 %v101_v26, %v100_v25 }
 0x1ca   :  { %v2397_v30 = vpop.eup %2007  ;;  %v943_v33 = vsel %vm104_vm0, %v2393_v29, 0.0 }
 0x1cb   :  { %947 = vadd.xlane.f32.xlu1 %v946_v21  ;;  %v937_v31 = vsel %vm104_vm0, %v2397_v30, 0.0  ;;  %v102_v21 = vld [vmem:[#allocation7 + $0x70] sm:$0xff] }
 0x1cc   :  { %938 = vadd.xlane.f32.xlu0 %v937_v31  ;;  %v103_v31 = vld [vmem:[#allocation7 + $0x78] sm:$0xff] }
 0x1ce   :  { %v2401_v32 = vpop.eup %2009 }
 0x1cf   :  { %v2405_v34 = vpop.eup %2011  ;;  %944 = vadd.xlane.f32.xlu1 %v943_v33  ;;  %v949_v35 = vsel %vm104_vm0, %v2401_v32, 0.0 }
 0x1d0   :  { %950 = vadd.xlane.f32.xlu0 %v949_v35  ;;  %v955_v39 = vsel %vm104_vm0, %v2405_v34, 0.0 }
 0x1d2   :  { %v2409_v38 = vpop.eup %2013 }
 0x1d3   :  { %v2413_v41 = vpop.eup %2015  ;;  %956 = vadd.xlane.f32.xlu1 %v955_v39  ;;  %v952_v42 = vsel %vm104_vm0, %v2409_v38, 0.0 }
 0x1d4   :  { %953 = vadd.xlane.f32.xlu0 %v952_v42  ;;  %v958_v45 = vsel %vm104_vm0, %v2413_v41, 0.0  ;;  %v1975_v42 = vpack.c.bf16 %v103_v31, %v102_v21 }
 0x1d7   :  { %959 = vadd.xlane.f32.xlu1 %v958_v45 }
 0x244   :  { %v918_v55 = vpop.xlane.xlu0 %917 }
 0x245   :  { %2017 = vrcp.f32 %v918_v55 }
 0x248   :  { %v924_v57 = vpop.xlane.xlu1 %923  ;;  %v915_v58 = vpop.xlane.xlu0 %914 }
 0x249   :  { %2019 = vrcp.f32 %v915_v58 }
 0x24a   :  { %2021 = vrcp.f32 %v924_v57 }
 0x24c   :  { %v921_v59 = vpop.xlane.xlu1 %920 }
 0x24d   :  { %2023 = vrcp.f32 %v921_v59  ;;  %v930_v60 = vpop.xlane.xlu0 %929 }
 0x24e   :  { %2025 = vrcp.f32 %v930_v60 }
 0x24f   :  { %v2018_v0 = vpop.eup %2017 }
 0x250   :  { %v936_v62 = vpop.xlane.xlu1 %935  ;;  %v978_v11 = vmul.f32 %v2018_v0, %v2347_v47 }
 0x251   :  { %v927_v63 = vpop.xlane.xlu0 %926 }
 0x252   :  { %2027 = vrcp.f32 %v927_v63 }
 0x253   :  { %v2020_v4 = vpop.eup %2019  ;;  %2029 = vrcp.f32 %v936_v62 }
 0x254   :  { %v933_v5 = vpop.xlane.xlu1 %932  ;;  %v977_v9 = vmul.f32 %v2020_v4, %v2351_v51  ;;  %v2022_v10 = vpop.eup %2021 }
 0x255   :  { %2031 = vrcp.f32 %v933_v5  ;;  %v942_v8 = vpop.xlane.xlu0 %941  ;;  %v980_v22 = vmul.f32 %v2022_v10, %v2355_v56 }
 0x256   :  { %1847 = vmatprep.mubr.msk.f32.mxu0 %vm104_vm0, %v977_v9  ;;  %2033 = vrcp.f32 %v942_v8 }
 0x257   :  { %v2024_v16 = vpop.eup %2023  ;;  %1848 = vmatmul.mubr.msk.f32.vlgmr.msra.gmra.mrb[8].mxu0 %vm104_vm0, %v978_v11 }
 0x258   :  { %v948_v20 = vpop.xlane.xlu1 %947  ;;  %v979_v17 = vmul.f32 %v2024_v16, %v2361_v61  ;;  %1958 = vmatpush3.bf16.msra.mxu0 %v1955_v50  ;;  %v2026_v47 = vpop.eup %2025 }
 0x259   :  { %v939_v51 = vpop.xlane.xlu0 %938  ;;  %1964 = vmatprep.subr.bf16.mxu0 %v1963_v7  ;;  %v982_v35 = vmul.f32 %v2026_v47, %v2369_v6 }
 0x25a   :  { %1854 = vmatprep.mubr.msk.f32.mxu1 %vm104_vm0, %v979_v17  ;;  %2035 = vrcp.f32 %v939_v51 }
 0x25b   :  { %1855 = vmatmul.mubr.msk.f32.vlgmr.msra.gmra.mrb[8].mxu1 %vm104_vm0, %v980_v22  ;;  %2037 = vrcp.f32 %v948_v20 }
 0x25c   :  { %v945_v18 = vpop.xlane.xlu1 %944  ;;  %1962 = vmatpush3.bf16.msra.mxu1 %v1959_v54  ;;  %v2028_v28 = vpop.eup %2027 }
 0x25d   :  { %2039 = vrcp.f32 %v945_v18  ;;  %1968 = vmatprep.subr.bf16.mxu1 %v1967_v23  ;;  %v2030_v56 = vpop.eup %2029  ;;  %v951_v61 = vpop.xlane.xlu0 %950  ;;  %v981_v19 = vmul.f32 %v2028_v28, %v2379_v15 }
 0x25e   :  { %2041 = vrcp.f32 %v951_v61  ;;  %v984_v40 = vmul.f32 %v2030_v56, %v2365_v2 }
 0x25f   :  { %v2032_v33 = vpop.eup %2031  ;;  %1861 = vmatprep.mubr.msk.f32.mxu0 %vm104_vm0, %v981_v19 }
 0x260   :  { %v957_v37 = vpop.xlane.xlu1 %956  ;;  %v983_v39 = vmul.f32 %v2032_v33, %v2375_v12  ;;  %1862 = vmatmul.mubr.msk.f32.vlgmr.msra.gmra.mrb[10].mxu0 %vm104_vm0, %v982_v35  ;;  %v2034_v6 = vpop.eup %2033 }
 0x261   :  { %2043 = vrcp.f32 %v957_v37  ;;  %v954_v43 = vpop.xlane.xlu0 %953  ;;  %1966 = vmatpush3.bf16.msra.mxu0 %v1963_v7  ;;  %v986_v46 = vmul.f32 %v2034_v6, %v2389_v27 }
 0x262   :  { %1868 = vmatprep.mubr.msk.f32.mxu1 %vm104_vm0, %v983_v39  ;;  %2045 = vrcp.f32 %v954_v43  ;;  %1972 = vmatprep.subr.bf16.mxu0 %v1971_v36 }
 0x263   :  { %1869 = vmatmul.mubr.msk.f32.vlgmr.msra.gmra.mrb[10].mxu1 %vm104_vm0, %v984_v40 }
 0x264   :  { %v960_v15 = vpop.xlane.xlu1 %959  ;;  %1970 = vmatpush3.bf16.msra.mxu1 %v1967_v23  ;;  %v2036_v44 = vpop.eup %2035 }
 0x265   :  { %2047 = vrcp.f32 %v960_v15  ;;  %1976 = vmatprep.subr.bf16.mxu1 %v1975_v42  ;;  %v2038_v12 = vpop.eup %2037  ;;  %v985_v2 = vmul.f32 %v2036_v44, %v2397_v30 }
 0x266   :  { %v988_v50 = vmul.f32 %v2038_v12, %v2385_v24 }
 0x267   :  { %v2040_v45 = vpop.eup %2039  ;;  %1875 = vmatprep.mubr.msk.f32.mxu0 %vm104_vm0, %v985_v2 }
 0x268   :  { %v987_v48 = vmul.f32 %v2040_v45, %v2393_v29  ;;  %v2042_v49 = vpop.eup %2041  ;;  %1876 = vmatmul.mubr.msk.f32.vlgmr.msra.gmra.mrb[12].mxu0 %vm104_vm0, %v986_v46 }
 0x269   :  { %v989_v52 = vmul.f32 %v2042_v49, %v2401_v32  ;;  %1974 = vmatpush3.bf16.msra.mxu0 %v1971_v36 }
 0x26a   :  { %1882 = vmatprep.mubr.msk.f32.mxu1 %vm104_vm0, %v987_v48 }
 0x26b   :  { %v2044_v53 = vpop.eup %2043  ;;  %1883 = vmatmul.mubr.msk.f32.vlgmr.msra.gmra.mrb[12].mxu1 %vm104_vm0, %v988_v50  ;;  %1889 = vmatprep.mubr.msk.f32.mxu0 %vm104_vm0, %v989_v52 }
 0x26c   :  { %1978 = vmatpush3.bf16.msra.mxu1 %v1975_v42  ;;  %v991_v27 = vmul.f32 %v2044_v53, %v2405_v34  ;;  %v2046_v30 = vpop.eup %2045 }
 0x26d   :  { %v990_v29 = vmul.f32 %v2046_v30, %v2409_v38 }
 0x26e   :  { %1896 = vmatprep.mubr.msk.f32.mxu1 %vm104_vm0, %v991_v27 }
 0x26f   :  { %v2048_v24 = vpop.eup %2047  ;;  %1890 = vmatmul.mubr.msk.f32.vlgmr.msra.gmra.mrb[14].mxu0 %vm104_vm0, %v990_v29 }
 0x270   :  { %v992_v54 = vmul.f32 %v2048_v24, %v2413_v41 }
 0x272   :  { %1897 = vmatmul.mubr.msk.f32.vlgmr.msra.gmra.mrb[14].mxu1 %vm104_vm0, %v992_v54 }
 0x32a   :  { %v1849_v32 = vpop.f32.mrb[8].mxu0 }
 0x32b   :  { %1642 = vst.msk [vmem:[#allocation8 + $0x8] sm:$0xff] %vm104_vm0, %v1849_v32  ;;  %v1065_v55 = vpop.f32.mrb[9].mxu0 }
 0x32c   :  { %1641 = vst.msk [vmem:[#allocation8] sm:$0xff] %vm104_vm0, %v1065_v55 }
 0x32e   :  { %v1856_v57 = vpop.f32.mrb[8].mxu1 }
 0x32f   :  { %1644 = vst.msk [vmem:[#allocation8 + $0x18] sm:$0xff] %vm104_vm0, %v1856_v57  ;;  %v1146_v34 = vpop.f32.mrb[9].mxu1 }
 0x330   :  { %1643 = vst.msk [vmem:[#allocation8 + $0x10] sm:$0xff] %vm104_vm0, %v1146_v34 }
 0x333   :  { %v1863_v38 = vpop.f32.mrb[10].mxu0 }
 0x334   :  { %1646 = vst.msk [vmem:[#allocation8 + $0x28] sm:$0xff] %vm104_vm0, %v1863_v38  ;;  %v1227_v41 = vpop.f32.mrb[11].mxu0 }
 0x335   :  { %1645 = vst.msk [vmem:[#allocation8 + $0x20] sm:$0xff] %vm104_vm0, %v1227_v41 }
 0x336   :  { %v1870_v58 = vpop.f32.mrb[10].mxu1 }
 0x337   :  { %1648 = vst.msk [vmem:[#allocation8 + $0x38] sm:$0xff] %vm104_vm0, %v1870_v58  ;;  %v1308_v59 = vpop.f32.mrb[11].mxu1 }
 0x338   :  { %1647 = vst.msk [vmem:[#allocation8 + $0x30] sm:$0xff] %vm104_vm0, %v1308_v59 }
 0x33b   :  { %v1877_v60 = vpop.f32.mrb[12].mxu0 }
 0x33c   :  { %1650 = vst.msk [vmem:[#allocation8 + $0x48] sm:$0xff] %vm104_vm0, %v1877_v60  ;;  %v1389_v62 = vpop.f32.mrb[13].mxu0 }
 0x33d   :  { %1649 = vst.msk [vmem:[#allocation8 + $0x40] sm:$0xff] %vm104_vm0, %v1389_v62 }
 0x33e   :  { %v1884_v63 = vpop.f32.mrb[12].mxu1 }
 0x33f   :  { %1652 = vst.msk [vmem:[#allocation8 + $0x58] sm:$0xff] %vm104_vm0, %v1884_v63  ;;  %v1470_v0 = vpop.f32.mrb[13].mxu1 }
 0x340   :  { %1651 = vst.msk [vmem:[#allocation8 + $0x50] sm:$0xff] %vm104_vm0, %v1470_v0 }
 0x342   :  { %v1891_v1 = vpop.f32.mrb[14].mxu0 }
 0x343   :  { %1654 = vst.msk [vmem:[#allocation8 + $0x68] sm:$0xff] %vm104_vm0, %v1891_v1  ;;  %v1551_v3 = vpop.f32.mrb[15].mxu0 }
 0x344   :  { %1653 = vst.msk [vmem:[#allocation8 + $0x60] sm:$0xff] %vm104_vm0, %v1551_v3 }
 0x345   :  { %v1898_v4 = vpop.f32.mrb[14].mxu1 }
 0x346   :  { %1656 = vst.msk [vmem:[#allocation8 + $0x78] sm:$0xff] %vm104_vm0, %v1898_v4  ;;  %v1632_v5 = vpop.f32.mrb[15].mxu1 }
 0x347   :  { %1655 = vst.msk [vmem:[#allocation8 + $0x70] sm:$0xff] %vm104_vm0, %v1632_v5 }
 0x348   :  { %2126 = shalt.err (!%p2123_p0)
}
 0x349   :  { %s2127_s27 = scalar_lea.hbm %s2485_s3, 2048 }
 0x34a   :  { %p2128_p1 = scmp.ne.s32.totalorder %s2485_s3, %s2127_s27  ;;  %p2131_p2 = scmp.lt.u32.totalorder %s2127_s27, %s2485_s3 }
 0x34c   :  { %p2133_p3 = pnand %p2131_p2, %p2128_p1 }
 0x34e   :  { %2136 = shalt.err (!%p2133_p3)
}
 0x34f   :  { %1668 = dma.vmem_to_hbm [thread:$0]  %s1663_s21, 2048, %s2485_s3, [#allocation4], %s2145_s24, %s2145_s24, %s2146_s25  }
 0x350   :  { %2141 = dma.done.wait [#allocation4], 2048  }
 0x351   :  { %2142 = vsyncadd [#allocation4], 4294965248 }
 0x352   :  { %1672 = vsyncpa [#allocation3], 1 }
 0x353   :  { %1673 = vsyncpa [#allocation6], 1 }
 0x354   :  { %1674 = vsyncpa [#allocation4], 1 }

</bundles_post_ra>
